<compile_context>
chip_gen: v5e
topology: v5e:2x2
jax: 0.10.0
libtpu: 0.0.40
codegen_flags: <defaults>
</compile_context>

<pallas_src>
import functools

import jax
import jax.numpy as jnp
from jax.experimental import pallas as pl
from jax.experimental.pallas import tpu as pltpu

_SUBLANE = 8  # f32 sublane count; batch is padded to a multiple of this


def _full_spec(shape):
    # whole-array block, grid=() -> index_map takes no args
    return pl.BlockSpec(shape, lambda: (0,) * len(shape))


def _lstm_fc_kernel(x_ref, wih_ref, whh_ref, b_ref, wfc_ref, bfc_ref, out_ref):
    """x_ref: (S*Bp, I) time-major flattened, batch padded to 8-sublane multiple;
    wih_ref: (I, 4H), whh_ref: (H, 4H), b_ref: (1, 4H)  [g-quarter pre-scaled x2];
    wfc_ref: (1, H); bfc_ref: (1, 1); out_ref: (Bp, 1)."""
    SB = x_ref.shape[0]
    Bp = out_ref.shape[0]
    S = SB // Bp
    H = whh_ref.shape[0]

    # ---- hoisted input projection: one MXU call for all timesteps, combined
    # bias folded in once (the only bf16 matmul when the bf16 path is on) ----
    gates_x = (
        jnp.dot(x_ref[...], wih_ref[...], preferred_element_type=jnp.float32)
        + b_ref[...]
    )                                                     # (S*Bp, 4H) f32

    # recurrent weights loaded once, outside the loop (f32 always).
    # NOTE: holding W_hh resident in the MXU via pltpu.matmul_push_rhs /
    # matmul_acc_lhs / matmul_pop would shave the per-step weight push off the
    # serial chain; kept as jnp.dot for robustness across generations.
    whh = whh_ref[...]                                    # (H, 4H)

    # h / c carried in vregs (no VMEM scratch round-trips on the serial path)
    h = jnp.zeros((Bp, H), jnp.float32)
    c = jnp.zeros((Bp, H), jnp.float32)

    # fully-unrolled static recurrence (S is tiny & static).  Bp is a multiple
    # of 8 sublanes, so each t*Bp slice below is a sublane-aligned vreg select.
    for t in range(S):
        gates = gates_x[t * Bp:(t + 1) * Bp, :] + jnp.dot(
            h, whh, preferred_element_type=jnp.float32
        )                                                 # (Bp, 4H) f32
        # single EUP pass: g-gate lanes already carry a 2x scale, and
        # tanh(x) == 2*sigmoid(2x) - 1, so only sigmoid is needed here.
        sig = jax.nn.sigmoid(gates)
        i_g = sig[:, 0 * H:1 * H]
        f_g = sig[:, 1 * H:2 * H]
        g_g = 2.0 * sig[:, 2 * H:3 * H] - 1.0             # VPU, replaces tanh pass
        o_g = sig[:, 3 * H:4 * H]
        c = f_g * c + i_g * g_g
        h = o_g * jnp.tanh(c)

    # ---- fc(h_T): VPU multiply + lane reduction (avoid an N=1 MXU matmul) ----
    out_ref[...] = (
        jnp.sum(h * wfc_ref[...], axis=-1, keepdims=True) + bfc_ref[...]
    ).astype(out_ref.dtype)


@functools.partial(jax.jit, static_argnames=("use_bf16_matmul",))
def revenue_rnn_forward(x, w_ih, w_hh, b_ih, b_hh, w_fc, b_fc,
                        use_bf16_matmul=False):
    """x: (B, S, I) float32. Returns fc(h_T).squeeze() (shape (B,) for B > 1).

    use_bf16_matmul=True casts only the hoisted-projection operands to bf16
    (f32 accumulation); the recurrence stays f32 so the 1e-5 check still holds
    to good approximation.
    """
    B, S, I = x.shape
    H = w_hh.shape[1]
    Bp = ((B + _SUBLANE - 1) // _SUBLANE) * _SUBLANE

    # Pad batch so every per-step slice in the kernel is sublane-aligned;
    # padded rows run the LSTM on zeros and are sliced off afterwards.
    x_pad = jnp.pad(x, ((0, Bp - B), (0, 0), (0, 0)))
    # time-major, pre-flattened so the hoisted projection is a plain 2-D matmul
    x_flat = jnp.transpose(x_pad, (1, 0, 2)).reshape(S * Bp, I)   # (S*Bp, I)

    # Fold the 2x pre-scale of the g-gate (tanh == 2*sigmoid(2x)-1) into the
    # weights/bias once so the kernel needs a single sigmoid per step.
    gate_scale = jnp.concatenate([
        jnp.ones((2 * H,), jnp.float32),
        jnp.full((H,), 2.0, jnp.float32),
        jnp.ones((H,), jnp.float32),
    ])                                                           # (4H,)
    wih_t = w_ih.T * gate_scale[None, :]                         # (I, 4H)
    whh_t = w_hh.T * gate_scale[None, :]                         # (H, 4H)
    b = ((b_ih + b_hh) * gate_scale).reshape(1, 4 * H)           # (1, 4H)
    wfc_row = w_fc.reshape(1, H)                                 # (1, H)
    bfc = b_fc.reshape(1, 1)                                     # (1, 1)

    if use_bf16_matmul:
        # only the hoisted projection goes bf16; W_hh / h / c stay f32 so there
        # are no per-step casts on the serial recurrence path.
        x_flat = x_flat.astype(jnp.bfloat16)
        wih_t = wih_t.astype(jnp.bfloat16)

    out = pl.pallas_call(
        _lstm_fc_kernel,
        out_shape=jax.ShapeDtypeStruct((Bp, 1), jnp.float32),
        in_specs=[
            _full_spec((S * Bp, I)),
            _full_spec((I, 4 * H)),
            _full_spec((H, 4 * H)),
            _full_spec((1, 4 * H)),
            _full_spec((1, H)),
            _full_spec((1, 1)),
        ],
        out_specs=_full_spec((Bp, 1)),
        compiler_params=pltpu.CompilerParams(
            # let XLA fuse the wrapper's pad/transpose/reshape of x into this
            # call's operand instead of materializing a separate tiny copy.
            allow_input_fusion=[True, False, False, False, False, False],
        ),
        cost_estimate=pl.CostEstimate(
            flops=2 * S * Bp * I * 4 * H + 2 * S * Bp * H * 4 * H + 2 * Bp * H,
            transcendentals=S * Bp * 5 * H,
            bytes_accessed=4 * (S * Bp * I + I * 4 * H + H * 4 * H
                                + 4 * H + H + 1 + Bp),
        ),
    )(x_flat, wih_t, whh_t, b, wfc_row, bfc)

    # mirror torch's out.squeeze() (also drops the batch dim when B == 1)
    return jnp.squeeze(out[:B, :])


def _reference_forward(x, w_ih, w_hh, b_ih, b_hh, w_fc, b_fc):
    """Pure-JAX reference mirroring torch.nn.LSTM + Linear."""
    B, S, I = x.shape
    H = w_hh.shape[1]
    h = jnp.zeros((B, H), jnp.float32)
    c = jnp.zeros((B, H), jnp.float32)
    for t in range(S):
        gates = x[:, t, :] @ w_ih.T + b_ih + h @ w_hh.T + b_hh
        i_g = jax.nn.sigmoid(gates[:, 0 * H:1 * H])
        f_g = jax.nn.sigmoid(gates[:, 1 * H:2 * H])
        g_g = jnp.tanh(gates[:, 2 * H:3 * H])
        o_g = jax.nn.sigmoid(gates[:, 3 * H:4 * H])
        c = f_g * c + i_g * g_g
        h = o_g * jnp.tanh(c)
    return (h @ w_fc.T + b_fc).squeeze(-1)


if __name__ == "__main__":
    # Small shapes implied by the module: batch=2, seq=8, input_size=4, hidden=32
    B, S, I, H = 2, 8, 4, 32

    key = jax.random.PRNGKey(0)
    ks = jax.random.split(key, 7)
    bound = 1.0 / jnp.sqrt(H)   # PyTorch default init range for LSTM/Linear

    x = jax.random.normal(ks[0], (B, S, I), dtype=jnp.float32)
    w_ih = jax.random.uniform(ks[1], (4 * H, I), jnp.float32, -bound, bound)
    w_hh = jax.random.uniform(ks[2], (4 * H, H), jnp.float32, -bound, bound)
    b_ih = jax.random.uniform(ks[3], (4 * H,), jnp.float32, -bound, bound)
    b_hh = jax.random.uniform(ks[4], (4 * H,), jnp.float32, -bound, bound)
    w_fc = jax.random.uniform(ks[5], (1, H), jnp.float32, -bound, bound)
    b_fc = jax.random.uniform(ks[6], (1,), jnp.float32, -bound, bound)

    out = revenue_rnn_forward(x, w_ih, w_hh, b_ih, b_hh, w_fc, b_fc)
    out = jax.block_until_ready(out)

    ref = _reference_forward(x, w_ih, w_hh, b_ih, b_hh, w_fc, b_fc)
    assert out.shape == (B,), out.shape
    assert jnp.allclose(out, ref, atol=1e-5, rtol=1e-5), (out, ref)

    print("KERNEL_OK")
</pallas_src>

<mosaic_0001>
module attributes {stable_mosaic.version = 11 : i64} {
  func.func @_lstm_fc_kernel(%arg0: memref<64x4xf32, #tpu.memory_space<vmem>>, %arg1: memref<4x128xf32, #tpu.memory_space<vmem>>, %arg2: memref<32x128xf32, #tpu.memory_space<vmem>>, %arg3: memref<1x128xf32, #tpu.memory_space<vmem>>, %arg4: memref<1x32xf32, #tpu.memory_space<vmem>>, %arg5: memref<1x1xf32, #tpu.memory_space<vmem>>, %arg6: memref<8x1xf32, #tpu.memory_space<vmem>>) attributes {dimension_semantics = [], scalar_prefetch = 0 : i64, scratch_operands = 0 : i64, tpu.core_type = #tpu.core_type<tc>} {
    %c0 = arith.constant 0 : index
    %c0_0 = arith.constant 0 : index
    %0 = vector.load %arg0[%c0, %c0_0] : memref<64x4xf32, #tpu.memory_space<vmem>>, vector<64x4xf32>
    %c0_1 = arith.constant 0 : index
    %c0_2 = arith.constant 0 : index
    %1 = vector.load %arg1[%c0_1, %c0_2] : memref<4x128xf32, #tpu.memory_space<vmem>>, vector<4x128xf32>
    %cst = arith.constant dense<0.000000e+00> : vector<64x128xf32>
    %2 = tpu.matmul %0, %1, %cst {dimension_numbers = #tpu.dot_dimension_numbers<[1], [0], [0], [1], [0, 0, 1, 1], [], []>} : vector<64x4xf32>, vector<4x128xf32>, vector<64x128xf32> -> vector<64x128xf32>
    %c0_3 = arith.constant 0 : index
    %c0_4 = arith.constant 0 : index
    %3 = vector.load %arg3[%c0_3, %c0_4] : memref<1x128xf32, #tpu.memory_space<vmem>>, vector<1x128xf32>
    %4 = vector.broadcast %3 : vector<1x128xf32> to vector<64x128xf32>
    %5 = arith.addf %2, %4 : vector<64x128xf32>
    %c0_5 = arith.constant 0 : index
    %c0_6 = arith.constant 0 : index
    %6 = vector.load %arg2[%c0_5, %c0_6] : memref<32x128xf32, #tpu.memory_space<vmem>>, vector<32x128xf32>
    %cst_7 = arith.constant 0.000000e+00 : f32
    %7 = vector.broadcast %cst_7 : f32 to vector<8x32xf32>
    %cst_8 = arith.constant 0.000000e+00 : f32
    %8 = vector.broadcast %cst_8 : f32 to vector<8x32xf32>
    %9 = vector.extract_strided_slice %5 {offsets = [0, 0], sizes = [8, 128], strides = [1, 1]} : vector<64x128xf32> to vector<8x128xf32>
    %cst_9 = arith.constant dense<0.000000e+00> : vector<8x128xf32>
    %10 = tpu.matmul %7, %6, %cst_9 {dimension_numbers = #tpu.dot_dimension_numbers<[1], [0], [0], [1], [0, 0, 1, 1], [], []>} : vector<8x32xf32>, vector<32x128xf32>, vector<8x128xf32> -> vector<8x128xf32>
    %11 = arith.addf %9, %10 : vector<8x128xf32>
    %12 = arith.negf %11 : vector<8x128xf32>
    %13 = math.exp %12 : vector<8x128xf32>
    %cst_10 = arith.constant 1.000000e+00 : f32
    %14 = vector.broadcast %cst_10 : f32 to vector<8x128xf32>
    %15 = arith.addf %14, %13 : vector<8x128xf32>
    %16 = arith.divf %14, %15 : vector<8x128xf32>
    %17 = vector.extract_strided_slice %16 {offsets = [0, 0], sizes = [8, 32], strides = [1, 1]} : vector<8x128xf32> to vector<8x32xf32>
    %18 = vector.extract_strided_slice %16 {offsets = [0, 32], sizes = [8, 32], strides = [1, 1]} : vector<8x128xf32> to vector<8x32xf32>
    %19 = vector.extract_strided_slice %16 {offsets = [0, 64], sizes = [8, 32], strides = [1, 1]} : vector<8x128xf32> to vector<8x32xf32>
    %cst_11 = arith.constant 2.000000e+00 : f32
    %20 = vector.broadcast %cst_11 : f32 to vector<8x32xf32>
    %21 = arith.mulf %20, %19 : vector<8x32xf32>
    %cst_12 = arith.constant 1.000000e+00 : f32
    %22 = vector.broadcast %cst_12 : f32 to vector<8x32xf32>
    %23 = arith.subf %21, %22 : vector<8x32xf32>
    %24 = vector.extract_strided_slice %16 {offsets = [0, 96], sizes = [8, 32], strides = [1, 1]} : vector<8x128xf32> to vector<8x32xf32>
    %25 = arith.mulf %18, %8 : vector<8x32xf32>
    %26 = arith.mulf %17, %23 : vector<8x32xf32>
    %27 = arith.addf %25, %26 : vector<8x32xf32>
    %28 = math.tanh %27 : vector<8x32xf32>
    %29 = arith.mulf %24, %28 : vector<8x32xf32>
    %30 = vector.extract_strided_slice %5 {offsets = [8, 0], sizes = [8, 128], strides = [1, 1]} : vector<64x128xf32> to vector<8x128xf32>
    %cst_13 = arith.constant dense<0.000000e+00> : vector<8x128xf32>
    %31 = tpu.matmul %29, %6, %cst_13 {dimension_numbers = #tpu.dot_dimension_numbers<[1], [0], [0], [1], [0, 0, 1, 1], [], []>} : vector<8x32xf32>, vector<32x128xf32>, vector<8x128xf32> -> vector<8x128xf32>
    %32 = arith.addf %30, %31 : vector<8x128xf32>
    %33 = arith.negf %32 : vector<8x128xf32>
    %34 = math.exp %33 : vector<8x128xf32>
    %cst_14 = arith.constant 1.000000e+00 : f32
    %35 = vector.broadcast %cst_14 : f32 to vector<8x128xf32>
    %36 = arith.addf %35, %34 : vector<8x128xf32>
    %37 = arith.divf %35, %36 : vector<8x128xf32>
    %38 = vector.extract_strided_slice %37 {offsets = [0, 0], sizes = [8, 32], strides = [1, 1]} : vector<8x128xf32> to vector<8x32xf32>
    %39 = vector.extract_strided_slice %37 {offsets = [0, 32], sizes = [8, 32], strides = [1, 1]} : vector<8x128xf32> to vector<8x32xf32>
    %40 = vector.extract_strided_slice %37 {offsets = [0, 64], sizes = [8, 32], strides = [1, 1]} : vector<8x128xf32> to vector<8x32xf32>
    %cst_15 = arith.constant 2.000000e+00 : f32
    %41 = vector.broadcast %cst_15 : f32 to vector<8x32xf32>
    %42 = arith.mulf %41, %40 : vector<8x32xf32>
    %cst_16 = arith.constant 1.000000e+00 : f32
    %43 = vector.broadcast %cst_16 : f32 to vector<8x32xf32>
    %44 = arith.subf %42, %43 : vector<8x32xf32>
    %45 = vector.extract_strided_slice %37 {offsets = [0, 96], sizes = [8, 32], strides = [1, 1]} : vector<8x128xf32> to vector<8x32xf32>
    %46 = arith.mulf %39, %27 : vector<8x32xf32>
    %47 = arith.mulf %38, %44 : vector<8x32xf32>
    %48 = arith.addf %46, %47 : vector<8x32xf32>
    %49 = math.tanh %48 : vector<8x32xf32>
    %50 = arith.mulf %45, %49 : vector<8x32xf32>
    %51 = vector.extract_strided_slice %5 {offsets = [16, 0], sizes = [8, 128], strides = [1, 1]} : vector<64x128xf32> to vector<8x128xf32>
    %cst_17 = arith.constant dense<0.000000e+00> : vector<8x128xf32>
    %52 = tpu.matmul %50, %6, %cst_17 {dimension_numbers = #tpu.dot_dimension_numbers<[1], [0], [0], [1], [0, 0, 1, 1], [], []>} : vector<8x32xf32>, vector<32x128xf32>, vector<8x128xf32> -> vector<8x128xf32>
    %53 = arith.addf %51, %52 : vector<8x128xf32>
    %54 = arith.negf %53 : vector<8x128xf32>
    %55 = math.exp %54 : vector<8x128xf32>
    %cst_18 = arith.constant 1.000000e+00 : f32
    %56 = vector.broadcast %cst_18 : f32 to vector<8x128xf32>
    %57 = arith.addf %56, %55 : vector<8x128xf32>
    %58 = arith.divf %56, %57 : vector<8x128xf32>
    %59 = vector.extract_strided_slice %58 {offsets = [0, 0], sizes = [8, 32], strides = [1, 1]} : vector<8x128xf32> to vector<8x32xf32>
    %60 = vector.extract_strided_slice %58 {offsets = [0, 32], sizes = [8, 32], strides = [1, 1]} : vector<8x128xf32> to vector<8x32xf32>
    %61 = vector.extract_strided_slice %58 {offsets = [0, 64], sizes = [8, 32], strides = [1, 1]} : vector<8x128xf32> to vector<8x32xf32>
    %cst_19 = arith.constant 2.000000e+00 : f32
    %62 = vector.broadcast %cst_19 : f32 to vector<8x32xf32>
    %63 = arith.mulf %62, %61 : vector<8x32xf32>
    %cst_20 = arith.constant 1.000000e+00 : f32
    %64 = vector.broadcast %cst_20 : f32 to vector<8x32xf32>
    %65 = arith.subf %63, %64 : vector<8x32xf32>
    %66 = vector.extract_strided_slice %58 {offsets = [0, 96], sizes = [8, 32], strides = [1, 1]} : vector<8x128xf32> to vector<8x32xf32>
    %67 = arith.mulf %60, %48 : vector<8x32xf32>
    %68 = arith.mulf %59, %65 : vector<8x32xf32>
    %69 = arith.addf %67, %68 : vector<8x32xf32>
    %70 = math.tanh %69 : vector<8x32xf32>
    %71 = arith.mulf %66, %70 : vector<8x32xf32>
    %72 = vector.extract_strided_slice %5 {offsets = [24, 0], sizes = [8, 128], strides = [1, 1]} : vector<64x128xf32> to vector<8x128xf32>
    %cst_21 = arith.constant dense<0.000000e+00> : vector<8x128xf32>
    %73 = tpu.matmul %71, %6, %cst_21 {dimension_numbers = #tpu.dot_dimension_numbers<[1], [0], [0], [1], [0, 0, 1, 1], [], []>} : vector<8x32xf32>, vector<32x128xf32>, vector<8x128xf32> -> vector<8x128xf32>
    %74 = arith.addf %72, %73 : vector<8x128xf32>
    %75 = arith.negf %74 : vector<8x128xf32>
    %76 = math.exp %75 : vector<8x128xf32>
    %cst_22 = arith.constant 1.000000e+00 : f32
    %77 = vector.broadcast %cst_22 : f32 to vector<8x128xf32>
    %78 = arith.addf %77, %76 : vector<8x128xf32>
    %79 = arith.divf %77, %78 : vector<8x128xf32>
    %80 = vector.extract_strided_slice %79 {offsets = [0, 0], sizes = [8, 32], strides = [1, 1]} : vector<8x128xf32> to vector<8x32xf32>
    %81 = vector.extract_strided_slice %79 {offsets = [0, 32], sizes = [8, 32], strides = [1, 1]} : vector<8x128xf32> to vector<8x32xf32>
    %82 = vector.extract_strided_slice %79 {offsets = [0, 64], sizes = [8, 32], strides = [1, 1]} : vector<8x128xf32> to vector<8x32xf32>
    %cst_23 = arith.constant 2.000000e+00 : f32
    %83 = vector.broadcast %cst_23 : f32 to vector<8x32xf32>
    %84 = arith.mulf %83, %82 : vector<8x32xf32>
    %cst_24 = arith.constant 1.000000e+00 : f32
    %85 = vector.broadcast %cst_24 : f32 to vector<8x32xf32>
    %86 = arith.subf %84, %85 : vector<8x32xf32>
    %87 = vector.extract_strided_slice %79 {offsets = [0, 96], sizes = [8, 32], strides = [1, 1]} : vector<8x128xf32> to vector<8x32xf32>
    %88 = arith.mulf %81, %69 : vector<8x32xf32>
    %89 = arith.mulf %80, %86 : vector<8x32xf32>
    %90 = arith.addf %88, %89 : vector<8x32xf32>
    %91 = math.tanh %90 : vector<8x32xf32>
    %92 = arith.mulf %87, %91 : vector<8x32xf32>
    %93 = vector.extract_strided_slice %5 {offsets = [32, 0], sizes = [8, 128], strides = [1, 1]} : vector<64x128xf32> to vector<8x128xf32>
    %cst_25 = arith.constant dense<0.000000e+00> : vector<8x128xf32>
    %94 = tpu.matmul %92, %6, %cst_25 {dimension_numbers = #tpu.dot_dimension_numbers<[1], [0], [0], [1], [0, 0, 1, 1], [], []>} : vector<8x32xf32>, vector<32x128xf32>, vector<8x128xf32> -> vector<8x128xf32>
    %95 = arith.addf %93, %94 : vector<8x128xf32>
    %96 = arith.negf %95 : vector<8x128xf32>
    %97 = math.exp %96 : vector<8x128xf32>
    %cst_26 = arith.constant 1.000000e+00 : f32
    %98 = vector.broadcast %cst_26 : f32 to vector<8x128xf32>
    %99 = arith.addf %98, %97 : vector<8x128xf32>
    %100 = arith.divf %98, %99 : vector<8x128xf32>
    %101 = vector.extract_strided_slice %100 {offsets = [0, 0], sizes = [8, 32], strides = [1, 1]} : vector<8x128xf32> to vector<8x32xf32>
    %102 = vector.extract_strided_slice %100 {offsets = [0, 32], sizes = [8, 32], strides = [1, 1]} : vector<8x128xf32> to vector<8x32xf32>
    %103 = vector.extract_strided_slice %100 {offsets = [0, 64], sizes = [8, 32], strides = [1, 1]} : vector<8x128xf32> to vector<8x32xf32>
    %cst_27 = arith.constant 2.000000e+00 : f32
    %104 = vector.broadcast %cst_27 : f32 to vector<8x32xf32>
    %105 = arith.mulf %104, %103 : vector<8x32xf32>
    %cst_28 = arith.constant 1.000000e+00 : f32
    %106 = vector.broadcast %cst_28 : f32 to vector<8x32xf32>
    %107 = arith.subf %105, %106 : vector<8x32xf32>
    %108 = vector.extract_strided_slice %100 {offsets = [0, 96], sizes = [8, 32], strides = [1, 1]} : vector<8x128xf32> to vector<8x32xf32>
    %109 = arith.mulf %102, %90 : vector<8x32xf32>
    %110 = arith.mulf %101, %107 : vector<8x32xf32>
    %111 = arith.addf %109, %110 : vector<8x32xf32>
    %112 = math.tanh %111 : vector<8x32xf32>
    %113 = arith.mulf %108, %112 : vector<8x32xf32>
    %114 = vector.extract_strided_slice %5 {offsets = [40, 0], sizes = [8, 128], strides = [1, 1]} : vector<64x128xf32> to vector<8x128xf32>
    %cst_29 = arith.constant dense<0.000000e+00> : vector<8x128xf32>
    %115 = tpu.matmul %113, %6, %cst_29 {dimension_numbers = #tpu.dot_dimension_numbers<[1], [0], [0], [1], [0, 0, 1, 1], [], []>} : vector<8x32xf32>, vector<32x128xf32>, vector<8x128xf32> -> vector<8x128xf32>
    %116 = arith.addf %114, %115 : vector<8x128xf32>
    %117 = arith.negf %116 : vector<8x128xf32>
    %118 = math.exp %117 : vector<8x128xf32>
    %cst_30 = arith.constant 1.000000e+00 : f32
    %119 = vector.broadcast %cst_30 : f32 to vector<8x128xf32>
    %120 = arith.addf %119, %118 : vector<8x128xf32>
    %121 = arith.divf %119, %120 : vector<8x128xf32>
    %122 = vector.extract_strided_slice %121 {offsets = [0, 0], sizes = [8, 32], strides = [1, 1]} : vector<8x128xf32> to vector<8x32xf32>
    %123 = vector.extract_strided_slice %121 {offsets = [0, 32], sizes = [8, 32], strides = [1, 1]} : vector<8x128xf32> to vector<8x32xf32>
    %124 = vector.extract_strided_slice %121 {offsets = [0, 64], sizes = [8, 32], strides = [1, 1]} : vector<8x128xf32> to vector<8x32xf32>
    %cst_31 = arith.constant 2.000000e+00 : f32
    %125 = vector.broadcast %cst_31 : f32 to vector<8x32xf32>
    %126 = arith.mulf %125, %124 : vector<8x32xf32>
    %cst_32 = arith.constant 1.000000e+00 : f32
    %127 = vector.broadcast %cst_32 : f32 to vector<8x32xf32>
    %128 = arith.subf %126, %127 : vector<8x32xf32>
    %129 = vector.extract_strided_slice %121 {offsets = [0, 96], sizes = [8, 32], strides = [1, 1]} : vector<8x128xf32> to vector<8x32xf32>
    %130 = arith.mulf %123, %111 : vector<8x32xf32>
    %131 = arith.mulf %122, %128 : vector<8x32xf32>
    %132 = arith.addf %130, %131 : vector<8x32xf32>
    %133 = math.tanh %132 : vector<8x32xf32>
    %134 = arith.mulf %129, %133 : vector<8x32xf32>
    %135 = vector.extract_strided_slice %5 {offsets = [48, 0], sizes = [8, 128], strides = [1, 1]} : vector<64x128xf32> to vector<8x128xf32>
    %cst_33 = arith.constant dense<0.000000e+00> : vector<8x128xf32>
    %136 = tpu.matmul %134, %6, %cst_33 {dimension_numbers = #tpu.dot_dimension_numbers<[1], [0], [0], [1], [0, 0, 1, 1], [], []>} : vector<8x32xf32>, vector<32x128xf32>, vector<8x128xf32> -> vector<8x128xf32>
    %137 = arith.addf %135, %136 : vector<8x128xf32>
    %138 = arith.negf %137 : vector<8x128xf32>
    %139 = math.exp %138 : vector<8x128xf32>
    %cst_34 = arith.constant 1.000000e+00 : f32
    %140 = vector.broadcast %cst_34 : f32 to vector<8x128xf32>
    %141 = arith.addf %140, %139 : vector<8x128xf32>
    %142 = arith.divf %140, %141 : vector<8x128xf32>
    %143 = vector.extract_strided_slice %142 {offsets = [0, 0], sizes = [8, 32], strides = [1, 1]} : vector<8x128xf32> to vector<8x32xf32>
    %144 = vector.extract_strided_slice %142 {offsets = [0, 32], sizes = [8, 32], strides = [1, 1]} : vector<8x128xf32> to vector<8x32xf32>
    %145 = vector.extract_strided_slice %142 {offsets = [0, 64], sizes = [8, 32], strides = [1, 1]} : vector<8x128xf32> to vector<8x32xf32>
    %cst_35 = arith.constant 2.000000e+00 : f32
    %146 = vector.broadcast %cst_35 : f32 to vector<8x32xf32>
    %147 = arith.mulf %146, %145 : vector<8x32xf32>
    %cst_36 = arith.constant 1.000000e+00 : f32
    %148 = vector.broadcast %cst_36 : f32 to vector<8x32xf32>
    %149 = arith.subf %147, %148 : vector<8x32xf32>
    %150 = vector.extract_strided_slice %142 {offsets = [0, 96], sizes = [8, 32], strides = [1, 1]} : vector<8x128xf32> to vector<8x32xf32>
    %151 = arith.mulf %144, %132 : vector<8x32xf32>
    %152 = arith.mulf %143, %149 : vector<8x32xf32>
    %153 = arith.addf %151, %152 : vector<8x32xf32>
    %154 = math.tanh %153 : vector<8x32xf32>
    %155 = arith.mulf %150, %154 : vector<8x32xf32>
    %156 = vector.extract_strided_slice %5 {offsets = [56, 0], sizes = [8, 128], strides = [1, 1]} : vector<64x128xf32> to vector<8x128xf32>
    %cst_37 = arith.constant dense<0.000000e+00> : vector<8x128xf32>
    %157 = tpu.matmul %155, %6, %cst_37 {dimension_numbers = #tpu.dot_dimension_numbers<[1], [0], [0], [1], [0, 0, 1, 1], [], []>} : vector<8x32xf32>, vector<32x128xf32>, vector<8x128xf32> -> vector<8x128xf32>
    %158 = arith.addf %156, %157 : vector<8x128xf32>
    %159 = arith.negf %158 : vector<8x128xf32>
    %160 = math.exp %159 : vector<8x128xf32>
    %cst_38 = arith.constant 1.000000e+00 : f32
    %161 = vector.broadcast %cst_38 : f32 to vector<8x128xf32>
    %162 = arith.addf %161, %160 : vector<8x128xf32>
    %163 = arith.divf %161, %162 : vector<8x128xf32>
    %164 = vector.extract_strided_slice %163 {offsets = [0, 0], sizes = [8, 32], strides = [1, 1]} : vector<8x128xf32> to vector<8x32xf32>
    %165 = vector.extract_strided_slice %163 {offsets = [0, 32], sizes = [8, 32], strides = [1, 1]} : vector<8x128xf32> to vector<8x32xf32>
    %166 = vector.extract_strided_slice %163 {offsets = [0, 64], sizes = [8, 32], strides = [1, 1]} : vector<8x128xf32> to vector<8x32xf32>
    %cst_39 = arith.constant 2.000000e+00 : f32
    %167 = vector.broadcast %cst_39 : f32 to vector<8x32xf32>
    %168 = arith.mulf %167, %166 : vector<8x32xf32>
    %cst_40 = arith.constant 1.000000e+00 : f32
    %169 = vector.broadcast %cst_40 : f32 to vector<8x32xf32>
    %170 = arith.subf %168, %169 : vector<8x32xf32>
    %171 = vector.extract_strided_slice %163 {offsets = [0, 96], sizes = [8, 32], strides = [1, 1]} : vector<8x128xf32> to vector<8x32xf32>
    %172 = arith.mulf %165, %153 : vector<8x32xf32>
    %173 = arith.mulf %164, %170 : vector<8x32xf32>
    %174 = arith.addf %172, %173 : vector<8x32xf32>
    %175 = math.tanh %174 : vector<8x32xf32>
    %176 = arith.mulf %171, %175 : vector<8x32xf32>
    %c0_41 = arith.constant 0 : index
    %c0_42 = arith.constant 0 : index
    %177 = vector.load %arg4[%c0_41, %c0_42] : memref<1x32xf32, #tpu.memory_space<vmem>>, vector<1x32xf32>
    %178 = vector.broadcast %177 : vector<1x32xf32> to vector<8x32xf32>
    %179 = arith.mulf %176, %178 : vector<8x32xf32>
    %cst_43 = arith.constant dense<0.000000e+00> : vector<8xf32>
    %180 = vector.multi_reduction <add>, %179, %cst_43 [1] : vector<8x32xf32> to vector<8xf32>
    %181 = vector.shape_cast %180 : vector<8xf32> to vector<8x1xf32>
    %c0_44 = arith.constant 0 : index
    %c0_45 = arith.constant 0 : index
    %182 = vector.load %arg5[%c0_44, %c0_45] : memref<1x1xf32, #tpu.memory_space<vmem>>, vector<1x1xf32>
    %183 = vector.broadcast %182 : vector<1x1xf32> to vector<8x1xf32>
    %184 = arith.addf %181, %183 : vector<8x1xf32>
    %c0_46 = arith.constant 0 : index
    %c0_47 = arith.constant 0 : index
    %185 = vector.load %arg6[%c0_46, %c0_47] : memref<8x1xf32, #tpu.memory_space<vmem>>, vector<8x1xf32>
    tpu.vector_store %arg6[%c0_46, %c0_47], %184 {strides = array<i32>} : memref<8x1xf32, #tpu.memory_space<vmem>>, vector<8x1xf32>,
    return
  }
}

</mosaic_0001>

<bundles_post_ra>
// kernel: revenue_rnn_forward.2
= control target key start
LH: loop header
LB: loop body
LE: loop exit
PB: predicated region body
PF: predicated region fallthrough
CT: control target
= control target key end

     0   :  { %vm109_vm0 = vcmask 1043456   ;;  %vm84_vm1 = vcmask 31744   ;;  %v789_v7 = vmov 0.0   ;;  %s791_s10 = smov 32   ;;  %vm158_vm6 = vcmask 261120   ;;  %s792_s26 = smov 96   ;;  %s986_s0 = inlined_call_operand.vmem [shape: f32[4,128], index: 0, kind: input, shape index: {}]   ;;  %s987_s1 = inlined_call_operand.vmem [shape: f32[32,128], index: 1, kind: input, shape index: {}]   ;;  %s988_s2 = inlined_call_operand.vmem [shape: f32[1,128], index: 2, kind: input, shape index: {}]   ;;  %s989_s3 = inlined_call_operand.vmem [shape: f32[1,32], index: 3, kind: input, shape index: {}]   ;;  %s990_s4 = inlined_call_operand.<no memory space> [shape: f32[1,1], index: 4, kind: input, shape index: {}]   ;;  %s991_s5 = inlined_call_operand.vmem [shape: f32[8,8,4], index: 5, kind: input, shape index: {}]   ;;  %s992_s6 = inlined_call_operand.vmem [shape: f32[8,1], index: 6, kind: output, shape index: {}]  }
   0x1   :  { %v11_v0 = vstv %s990_s4  ;;  %v834_v1 = vld [vmem:[%s987_s1 + $0x18] sm:$0xff]  ;;  %v839_v2 = vld [vmem:[%s987_s1 + $0x10] sm:$0xff]  ;;  %v79_v3 = vld [vmem:[%s986_s0] sm:$0xf] }
   0x2   :  { %12 = vst [vmem:[#allocation2] sm:$0x1] %v11_v0  ;;  %174 = vmatpush.msra.mxu1 %v834_v1  ;;  %701 = vmatpush.msk.msra.mxu0 %vm109_vm0, %v79_v3  ;;  %v25_v4 = vld [vmem:[%s991_s5] sm:$0xff]  ;;  %v851_v5 = vld [vmem:[%s987_s1 + $0x8] sm:$0xff]  ;;  %v699_v0 = vld [vmem:[%s991_s5 + $0x30] sm:$0xff] }
   0x3   :  { %702 = vmatmul.msk.f32.vlgmr.msra.gmra.mxu0 %vm84_vm1, %v25_v4  ;;  %238 = vmatpush.msra.mxu2 %v834_v1  ;;  %v859_v6 = vld [vmem:[%s987_s1] sm:$0xff]  ;;  %v694_v36 = vld [vmem:[%s991_s5 + $0x8] sm:$0xff] }
   0x4   :  { %175 = vmatpush.msra.mxu1 %v839_v2  ;;  %733 = vmatpush.msk.msra.mxu3 %vm109_vm0, %v79_v3  ;;  %v885_v8 = vld [vmem:[%s988_s2] ss:$0 sm:$0xff]  ;;  %s790_s2 = smov 64   ;;  %v698_v63 = vld [vmem:[%s991_s5 + $0x28] sm:$0xff]  ;;  %v700_v3 = vld [vmem:[%s991_s5 + $0x38] sm:$0xff] }
   0x5   :  { %239 = vmatpush.msra.mxu2 %v839_v2  ;;  %707 = vmatmul.msk.f32.vlgmr.msra.gmra.mxu3 %vm84_vm1, %v698_v63 }
   0x6   :  { %302 = vmatpush.msrb.mxu3 %v834_v1  ;;  %176 = vmatpush.msra.mxu1 %v851_v5 }
   0x7   :  { %240 = vmatpush.msra.mxu2 %v851_v5 }
   0x8   :  { %303 = vmatpush.msrb.mxu3 %v839_v2  ;;  %177 = vmatpush.msra.mxu1 %v859_v6 }
   0x9   :  { %178 = vmatmul.f32.vlgmr.msra.gmra.mxu1 %v789_v7  ;;  %241 = vmatpush.msra.mxu2 %v859_v6 }
   0xa   :  { %304 = vmatpush.msrb.mxu3 %v851_v5  ;;  %366 = vmatpush.msrb.mxu1 %v834_v1 }
   0xb   :  { %430 = vmatpush.msrb.mxu2 %v834_v1  ;;  %703 = vmatmul.msk.f32.gmra.mxu0 %vm84_vm1, %v694_v36 }
   0xc   :  { %305 = vmatpush.msrb.mxu3 %v859_v6  ;;  %367 = vmatpush.msrb.mxu1 %v839_v2 }
   0xd   :  { %431 = vmatpush.msrb.mxu2 %v839_v2  ;;  %708 = vmatmul.msk.f32.gmra.mxu3 %vm84_vm1, %v699_v0 }
   0xe   :  { %368 = vmatpush.msrb.mxu1 %v851_v5  ;;  %494 = vmatpush.msra.mxu3 %v834_v1 }
   0xf   :  { %432 = vmatpush.msrb.mxu2 %v851_v5 }
  0x10   :  { %369 = vmatpush.msrb.mxu1 %v859_v6  ;;  %495 = vmatpush.msra.mxu3 %v839_v2 }
  0x11   :  { %433 = vmatpush.msrb.mxu2 %v859_v6 }
  0x12   :  { %558 = vmatpush.msra.mxu1 %v834_v1  ;;  %496 = vmatpush.msra.mxu3 %v851_v5 }
  0x14   :  { %559 = vmatpush.msra.mxu1 %v839_v2  ;;  %497 = vmatpush.msra.mxu3 %v859_v6 }
  0x15   :  { %709 = vmatmul.msk.f32.gmra.mxu3 %vm84_vm1, %v700_v3 }
  0x16   :  { %560 = vmatpush.msra.mxu1 %v851_v5 }
  0x18   :  { %561 = vmatpush.msra.mxu1 %v859_v6 }
  0x80   :  { %v130_v9 = vpop.f32.mrf.mxu0 }
  0x81   :  { %v131_v10 = vadd.f32 %v885_v8, %v130_v9 }
  0x86   :  { %v179_v11 = vpop.f32.mrf.mxu1 }
  0x87   :  { %v182_v12 = vadd.f32 %v179_v11, %v131_v10 }
  0x88   :  { %v133_v38 = vpop.f32.mrf.mxu0 }
  0x89   :  { %v710_v13 = vmul.f32 -1.442695, %v182_v12  ;;  %v134_v39 = vadd.f32 %v885_v8, %v133_v38 }
  0x8b   :  { %741 = vpow2.f32 %v710_v13 }
  0x91   :  { %v742_v14 = vpop.eup %741 }
  0x92   :  { %v186_v15 = vadd.f32 1.0, %v742_v14 }
  0x94   :  { %743 = vrcp.f32 %v186_v15  ;;  %v198_v19 = vand.u32 2147483648, %v186_v15  ;;  %v196_v21 = vand.u32 2147483647, %v186_v15  ;;  %vm192_vm3 = vweird.f32 %v186_v15 }
  0x96   :  { %v199_v23 = vor.u32 1.1754944e-38, %v198_v19  ;;  %vm197_vm5 = vcmp.eq.f32.partialorder %v196_v21, 8.507059e+37 }
  0x9a   :  { %v744_v16 = vpop.eup %743 }
  0x9b   :  { %v188_v17 = vmul.f32 %v744_v16, %v186_v15  ;;  %vm193_vm2 = vweird.f32 %v744_v16 }
  0x9c   :  { %vm194_vm4 = vmor %vm192_vm3, %vm193_vm2 }
  0x9d   :  { %v189_v18 = vsub.f32 1.0, %v188_v17 }
  0x9f   :  { %v190_v20 = vmul.f32 %v744_v16, %v189_v18 }
  0xa1   :  { %v191_v22 = vadd.f32 %v744_v16, %v190_v20 }
  0xa3   :  { %v195_v24 = vsel %vm194_vm4, %v744_v16, %v191_v22 }
  0xa4   :  { %v200_v25 = vsel %vm197_vm5, %v199_v23, %v195_v24 }
  0xa5   :  { %v202_v26 = vmul.f32 2.0, %v200_v25  ;;  %v204_v30 = vmul.f32 0.0, %v200_v25 }
  0xa7   :  { %v711_v27 = vadd.f32 -1.0, %v202_v26 }
  0xa9   :  { %206 = vrot.lane.b32.xlu0 %v711_v27, %s790_s2 }
 0x11b   :  { %v207_v28 = vpop.permute.xlu0 %206 }
 0x11c   :  { %v209_v29 = vmul.f32 %v207_v28, %v200_v25 }
 0x11e   :  { %211 = vrot.lane.b32.xlu0 %v209_v29, %s791_s10 }
 0x190   :  { %v212_v31 = vpop.permute.xlu0 %211 }
 0x191   :  { %v214_v32 = vadd.f32 %v212_v31, %v204_v30 }
 0x193   :  { %745 = vtanh.f32 %v214_v32 }
 0x199   :  { %v746_v33 = vpop.eup %745 }
 0x19a   :  { %217 = vrot.lane.b32.xlu1 %v746_v33, %s790_s2 }
 0x20c   :  { %v218_v34 = vpop.permute.xlu1 %217 }
 0x20d   :  { %v220_v35 = vmul.f32 %v218_v34, %v200_v25 }
 0x20f   :  { %222 = vrot.lane.b32.xlu1 %v220_v35, %s791_s10  ;;  %v696_v35 = vld [vmem:[%s991_s5 + $0x18] sm:$0xff] }
 0x281   :  { %v223_v37 = vpop.permute.xlu1 %222 }
 0x282   :  { %712 = vmatmul.msk.f32.vlgmr.msra.gmra.mxu2 %vm158_vm6, %v223_v37 }
 0x283   :  { %622 = vmatpush.msra.mxu2 %v834_v1 }
 0x285   :  { %623 = vmatpush.msra.mxu2 %v839_v2  ;;  %v695_v2 = vld [vmem:[%s991_s5 + $0x10] sm:$0xff] }
 0x286   :  { %704 = vmatmul.msk.f32.gmra.mxu0 %vm84_vm1, %v695_v2 }
 0x287   :  { %624 = vmatpush.msra.mxu2 %v851_v5 }
 0x289   :  { %625 = vmatpush.msra.mxu2 %v859_v6  ;;  %v927_v6 = vpop.f32.mrf.mxu3 }
 0x28e   :  { %705 = vmatmul.msk.f32.gmra.mxu0 %vm84_vm1, %v696_v35 }
 0x291   :  { %v929_v7 = vpop.f32.mrf.mxu3 }
 0x299   :  { %v931_v9 = vpop.f32.mrf.mxu3 }
 0x303   :  { %v136_v10 = vpop.f32.mrf.mxu0 }
 0x304   :  { %v137_v11 = vadd.f32 %v885_v8, %v136_v10 }
 0x305   :  { %v243_v40 = vpop.f32.mrf.mxu2 }
 0x306   :  { %v246_v41 = vadd.f32 %v243_v40, %v134_v39 }
 0x308   :  { %v713_v42 = vmul.f32 -1.442695, %v246_v41 }
 0x30a   :  { %747 = vpow2.f32 %v713_v42 }
 0x30b   :  { %v139_v39 = vpop.f32.mrf.mxu0 }
 0x30c   :  { %v140_v40 = vadd.f32 %v885_v8, %v139_v39 }
 0x310   :  { %v748_v43 = vpop.eup %747 }
 0x311   :  { %v250_v44 = vadd.f32 1.0, %v748_v43 }
 0x313   :  { %749 = vrcp.f32 %v250_v44  ;;  %v262_v48 = vand.u32 2147483648, %v250_v44  ;;  %v260_v50 = vand.u32 2147483647, %v250_v44  ;;  %vm256_vm8 = vweird.f32 %v250_v44 }
 0x315   :  { %v263_v52 = vor.u32 1.1754944e-38, %v262_v48  ;;  %vm261_vm10 = vcmp.eq.f32.partialorder %v260_v50, 8.507059e+37 }
 0x319   :  { %v750_v45 = vpop.eup %749 }
 0x31a   :  { %v252_v46 = vmul.f32 %v750_v45, %v250_v44  ;;  %vm257_vm7 = vweird.f32 %v750_v45 }
 0x31b   :  { %vm258_vm9 = vmor %vm256_vm8, %vm257_vm7 }
 0x31c   :  { %v253_v47 = vsub.f32 1.0, %v252_v46 }
 0x31e   :  { %v254_v49 = vmul.f32 %v750_v45, %v253_v47 }
 0x320   :  { %v255_v51 = vadd.f32 %v750_v45, %v254_v49 }
 0x322   :  { %v259_v53 = vsel %vm258_vm9, %v750_v45, %v255_v51 }
 0x323   :  { %v264_v54 = vsel %vm261_vm10, %v263_v52, %v259_v53 }
 0x324   :  { %v266_v55 = vmul.f32 2.0, %v264_v54  ;;  %v268_v59 = vmul.f32 %v264_v54, %v214_v32 }
 0x326   :  { %v714_v56 = vadd.f32 -1.0, %v266_v55 }
 0x328   :  { %270 = vrot.lane.b32.xlu2 %v714_v56, %s790_s2 }
 0x382   :  { %v271_v57 = vpop.permute.xlu2 %270 }
 0x383   :  { %v273_v58 = vmul.f32 %v271_v57, %v264_v54 }
 0x385   :  { %275 = vrot.lane.b32.xlu2 %v273_v58, %s791_s10 }
 0x3df   :  { %v276_v60 = vpop.permute.xlu2 %275 }
 0x3e0   :  { %v278_v61 = vadd.f32 %v276_v60, %v268_v59 }
 0x3e2   :  { %751 = vtanh.f32 %v278_v61 }
 0x3e8   :  { %v752_v62 = vpop.eup %751 }
 0x3e9   :  { %281 = vrot.lane.b32.xlu0 %v752_v62, %s790_s2 }
 0x45b   :  { %v282_v4 = vpop.permute.xlu0 %281 }
 0x45c   :  { %v284_v1 = vmul.f32 %v282_v4, %v264_v54  ;;  %v697_v4 = vld [vmem:[%s991_s5 + $0x20] sm:$0xff] }
 0x45d   :  { %706 = vmatmul.msk.f32.gmra.mxu0 %vm84_vm1, %v697_v4 }
 0x45e   :  { %286 = vrot.lane.b32.xlu1 %v284_v1, %s791_s10 }
 0x4d0   :  { %v287_v5 = vpop.permute.xlu1 %286 }
 0x4d1   :  { %715 = vmatmul.msk.f32.vlgmr.msrb.gmra.mxu3 %vm158_vm6, %v287_v5 }
 0x4da   :  { %v142_v2 = vpop.f32.mrf.mxu0 }
 0x4db   :  { %v143_v5 = vadd.f32 %v885_v8, %v142_v2 }
 0x554   :  { %v307_v12 = vpop.f32.mrf.mxu3 }
 0x555   :  { %v310_v13 = vadd.f32 %v307_v12, %v137_v11 }
 0x557   :  { %v716_v14 = vmul.f32 -1.442695, %v310_v13 }
 0x559   :  { %753 = vpow2.f32 %v716_v14 }
 0x55f   :  { %v754_v15 = vpop.eup %753 }
 0x560   :  { %v314_v16 = vadd.f32 1.0, %v754_v15 }
 0x562   :  { %755 = vrcp.f32 %v314_v16  ;;  %v326_v20 = vand.u32 2147483648, %v314_v16  ;;  %v324_v22 = vand.u32 2147483647, %v314_v16  ;;  %vm320_vm12 = vweird.f32 %v314_v16 }
 0x564   :  { %v327_v24 = vor.u32 1.1754944e-38, %v326_v20  ;;  %vm325_vm14 = vcmp.eq.f32.partialorder %v324_v22, 8.507059e+37 }
 0x568   :  { %v756_v17 = vpop.eup %755 }
 0x569   :  { %v316_v18 = vmul.f32 %v756_v17, %v314_v16  ;;  %vm321_vm11 = vweird.f32 %v756_v17 }
 0x56a   :  { %vm322_vm13 = vmor %vm320_vm12, %vm321_vm11 }
 0x56b   :  { %v317_v19 = vsub.f32 1.0, %v316_v18 }
 0x56d   :  { %v318_v21 = vmul.f32 %v756_v17, %v317_v19 }
 0x56f   :  { %v319_v23 = vadd.f32 %v756_v17, %v318_v21 }
 0x571   :  { %v323_v25 = vsel %vm322_vm13, %v756_v17, %v319_v23 }
 0x572   :  { %v328_v26 = vsel %vm325_vm14, %v327_v24, %v323_v25 }
 0x573   :  { %v330_v27 = vmul.f32 2.0, %v328_v26  ;;  %v332_v31 = vmul.f32 %v328_v26, %v278_v61 }
 0x575   :  { %v717_v28 = vadd.f32 -1.0, %v330_v27 }
 0x577   :  { %334 = vrot.lane.b32.xlu2 %v717_v28, %s790_s2 }
 0x5d1   :  { %v335_v29 = vpop.permute.xlu2 %334 }
 0x5d2   :  { %v337_v30 = vmul.f32 %v335_v29, %v328_v26 }
 0x5d4   :  { %339 = vrot.lane.b32.xlu0 %v337_v30, %s791_s10 }
 0x646   :  { %v340_v32 = vpop.permute.xlu0 %339 }
 0x647   :  { %v342_v33 = vadd.f32 %v340_v32, %v332_v31 }
 0x649   :  { %757 = vtanh.f32 %v342_v33 }
 0x64f   :  { %v758_v34 = vpop.eup %757 }
 0x650   :  { %345 = vrot.lane.b32.xlu1 %v758_v34, %s790_s2 }
 0x6c2   :  { %v346_v36 = vpop.permute.xlu1 %345 }
 0x6c3   :  { %v348_v37 = vmul.f32 %v346_v36, %v328_v26  ;;  %v146_v36 = vadd.f32 %v885_v8, %v927_v6 }
 0x6c5   :  { %350 = vrot.lane.b32.xlu2 %v348_v37, %s791_s10 }
 0x71f   :  { %v351_v38 = vpop.permute.xlu2 %350 }
 0x720   :  { %718 = vmatmul.msk.f32.vlgmr.msrb.gmra.mxu1 %vm158_vm6, %v351_v38 }
 0x79d   :  { %v371_v41 = vpop.f32.mrf.mxu1 }
 0x79e   :  { %v374_v42 = vadd.f32 %v371_v41, %v140_v40 }
 0x7a0   :  { %v719_v43 = vmul.f32 -1.442695, %v374_v42 }
 0x7a2   :  { %759 = vpow2.f32 %v719_v43 }
 0x7a8   :  { %v760_v44 = vpop.eup %759 }
 0x7a9   :  { %v378_v45 = vadd.f32 1.0, %v760_v44 }
 0x7ab   :  { %761 = vrcp.f32 %v378_v45  ;;  %v390_v49 = vand.u32 2147483648, %v378_v45  ;;  %v388_v51 = vand.u32 2147483647, %v378_v45  ;;  %vm384_vm0 = vweird.f32 %v378_v45 }
 0x7ad   :  { %v391_v53 = vor.u32 1.1754944e-38, %v390_v49  ;;  %vm389_vm3 = vcmp.eq.f32.partialorder %v388_v51, 8.507059e+37 }
 0x7b1   :  { %v762_v46 = vpop.eup %761 }
 0x7b2   :  { %v380_v47 = vmul.f32 %v762_v46, %v378_v45  ;;  %vm385_vm15 = vweird.f32 %v762_v46 }
 0x7b3   :  { %vm386_vm2 = vmor %vm384_vm0, %vm385_vm15 }
 0x7b4   :  { %v381_v48 = vsub.f32 1.0, %v380_v47 }
 0x7b6   :  { %v382_v50 = vmul.f32 %v762_v46, %v381_v48 }
 0x7b8   :  { %v383_v52 = vadd.f32 %v762_v46, %v382_v50 }
 0x7ba   :  { %v387_v54 = vsel %vm386_vm2, %v762_v46, %v383_v52 }
 0x7bb   :  { %v392_v55 = vsel %vm389_vm3, %v391_v53, %v387_v54 }
 0x7bc   :  { %v394_v56 = vmul.f32 2.0, %v392_v55  ;;  %v396_v60 = vmul.f32 %v392_v55, %v342_v33 }
 0x7be   :  { %v720_v57 = vadd.f32 -1.0, %v394_v56 }
 0x7c0   :  { %398 = vrot.lane.b32.xlu0 %v720_v57, %s790_s2 }
 0x832   :  { %v399_v58 = vpop.permute.xlu0 %398 }
 0x833   :  { %v401_v59 = vmul.f32 %v399_v58, %v392_v55 }
 0x835   :  { %403 = vrot.lane.b32.xlu1 %v401_v59, %s791_s10 }
 0x8a7   :  { %v404_v61 = vpop.permute.xlu1 %403 }
 0x8a8   :  { %v406_v62 = vadd.f32 %v404_v61, %v396_v60 }
 0x8aa   :  { %763 = vtanh.f32 %v406_v62 }
 0x8b0   :  { %v764_v63 = vpop.eup %763 }
 0x8b1   :  { %409 = vrot.lane.b32.xlu2 %v764_v63, %s790_s2 }
 0x90b   :  { %v410_v0 = vpop.permute.xlu2 %409 }
 0x90c   :  { %v412_v3 = vmul.f32 %v410_v0, %v392_v55 }
 0x90e   :  { %414 = vrot.lane.b32.xlu0 %v412_v3, %s791_s10 }
 0x980   :  { %v415_v1 = vpop.permute.xlu0 %414 }
 0x981   :  { %721 = vmatmul.msk.f32.vlgmr.msrb.gmra.mxu2 %vm158_vm6, %v415_v1 }
 0xa04   :  { %v435_v10 = vpop.f32.mrf.mxu2 }
 0xa05   :  { %v438_v11 = vadd.f32 %v435_v10, %v143_v5 }
 0xa07   :  { %v722_v12 = vmul.f32 -1.442695, %v438_v11 }
 0xa09   :  { %765 = vpow2.f32 %v722_v12 }
 0xa0f   :  { %v766_v13 = vpop.eup %765 }
 0xa10   :  { %v442_v14 = vadd.f32 1.0, %v766_v13 }
 0xa12   :  { %767 = vrcp.f32 %v442_v14  ;;  %v454_v18 = vand.u32 2147483648, %v442_v14  ;;  %v452_v20 = vand.u32 2147483647, %v442_v14  ;;  %vm448_vm1 = vweird.f32 %v442_v14 }
 0xa14   :  { %v455_v22 = vor.u32 1.1754944e-38, %v454_v18  ;;  %vm453_vm7 = vcmp.eq.f32.partialorder %v452_v20, 8.507059e+37 }
 0xa18   :  { %v768_v15 = vpop.eup %767 }
 0xa19   :  { %v444_v16 = vmul.f32 %v768_v15, %v442_v14  ;;  %vm449_vm4 = vweird.f32 %v768_v15 }
 0xa1a   :  { %vm450_vm5 = vmor %vm448_vm1, %vm449_vm4  ;;  %vm688_vm1 = vcmask 7168  }
 0xa1b   :  { %v445_v17 = vsub.f32 1.0, %v444_v16 }
 0xa1d   :  { %v446_v19 = vmul.f32 %v768_v15, %v445_v17 }
 0xa1f   :  { %v447_v21 = vadd.f32 %v768_v15, %v446_v19 }
 0xa21   :  { %v451_v23 = vsel %vm450_vm5, %v768_v15, %v447_v21 }
 0xa22   :  { %v456_v24 = vsel %vm453_vm7, %v455_v22, %v451_v23 }
 0xa23   :  { %v458_v25 = vmul.f32 2.0, %v456_v24  ;;  %v460_v29 = vmul.f32 %v456_v24, %v406_v62  ;;  %v149_v62 = vadd.f32 %v885_v8, %v929_v7 }
 0xa25   :  { %v723_v26 = vadd.f32 -1.0, %v458_v25 }
 0xa27   :  { %462 = vrot.lane.b32.xlu1 %v723_v26, %s790_s2 }
 0xa99   :  { %v463_v27 = vpop.permute.xlu1 %462 }
 0xa9a   :  { %v465_v28 = vmul.f32 %v463_v27, %v456_v24 }
 0xa9c   :  { %467 = vrot.lane.b32.xlu2 %v465_v28, %s791_s10  ;;  %v152_v28 = vadd.f32 %v885_v8, %v931_v9 }
 0xaf6   :  { %v468_v30 = vpop.permute.xlu2 %467 }
 0xaf7   :  { %v470_v31 = vadd.f32 %v468_v30, %v460_v29 }
 0xaf9   :  { %769 = vtanh.f32 %v470_v31 }
 0xaff   :  { %v770_v32 = vpop.eup %769 }
 0xb00   :  { %473 = vrot.lane.b32.xlu0 %v770_v32, %s790_s2 }
 0xb72   :  { %v474_v33 = vpop.permute.xlu0 %473 }
 0xb73   :  { %v476_v34 = vmul.f32 %v474_v33, %v456_v24 }
 0xb75   :  { %478 = vrot.lane.b32.xlu1 %v476_v34, %s791_s10 }
 0xbe7   :  { %v479_v35 = vpop.permute.xlu1 %478 }
 0xbe8   :  { %724 = vmatmul.msk.f32.vlgmr.msra.gmra.mxu3 %vm158_vm6, %v479_v35 }
 0xc6b   :  { %v499_v37 = vpop.f32.mrf.mxu3 }
 0xc6c   :  { %v502_v38 = vadd.f32 %v499_v37, %v146_v36 }
 0xc6e   :  { %v725_v39 = vmul.f32 -1.442695, %v502_v38 }
 0xc70   :  { %771 = vpow2.f32 %v725_v39 }
 0xc76   :  { %v772_v40 = vpop.eup %771 }
 0xc77   :  { %v506_v41 = vadd.f32 1.0, %v772_v40 }
 0xc79   :  { %773 = vrcp.f32 %v506_v41  ;;  %v518_v45 = vand.u32 2147483648, %v506_v41  ;;  %v516_v47 = vand.u32 2147483647, %v506_v41  ;;  %vm512_vm9 = vweird.f32 %v506_v41 }
 0xc7b   :  { %v519_v49 = vor.u32 1.1754944e-38, %v518_v45  ;;  %vm517_vm11 = vcmp.eq.f32.partialorder %v516_v47, 8.507059e+37 }
 0xc7f   :  { %v774_v42 = vpop.eup %773 }
 0xc80   :  { %v508_v43 = vmul.f32 %v774_v42, %v506_v41  ;;  %vm513_vm8 = vweird.f32 %v774_v42 }
 0xc81   :  { %vm514_vm10 = vmor %vm512_vm9, %vm513_vm8 }
 0xc82   :  { %v509_v44 = vsub.f32 1.0, %v508_v43 }
 0xc84   :  { %v510_v46 = vmul.f32 %v774_v42, %v509_v44 }
 0xc86   :  { %v511_v48 = vadd.f32 %v774_v42, %v510_v46  ;;  %v739_v46 = vld [vmem:[%s989_s3] ss:$0 sm:$0xff] }
 0xc88   :  { %v515_v50 = vsel %vm514_vm10, %v774_v42, %v511_v48 }
 0xc89   :  { %v520_v6 = vsel %vm517_vm11, %v519_v49, %v515_v50 }
 0xc8a   :  { %v522_v51 = vmul.f32 2.0, %v520_v6  ;;  %v524_v55 = vmul.f32 %v520_v6, %v470_v31 }
 0xc8c   :  { %v726_v52 = vadd.f32 -1.0, %v522_v51 }
 0xc8e   :  { %526 = vrot.lane.b32.xlu2 %v726_v52, %s790_s2 }
 0xce8   :  { %v527_v53 = vpop.permute.xlu2 %526 }
 0xce9   :  { %v529_v54 = vmul.f32 %v527_v53, %v520_v6 }
 0xceb   :  { %531 = vrot.lane.b32.xlu0 %v529_v54, %s791_s10 }
 0xd5d   :  { %v532_v56 = vpop.permute.xlu0 %531 }
 0xd5e   :  { %v534_v57 = vadd.f32 %v532_v56, %v524_v55  ;;  %v740_v56 = vld [vmem:[#allocation2] ss:$0 sm:$0xff] }
 0xd60   :  { %775 = vtanh.f32 %v534_v57 }
 0xd66   :  { %v776_v58 = vpop.eup %775 }
 0xd67   :  { %537 = vrot.lane.b32.xlu1 %v776_v58, %s790_s2 }
 0xdd9   :  { %v538_v59 = vpop.permute.xlu1 %537 }
 0xdda   :  { %v540_v60 = vmul.f32 %v538_v59, %v520_v6 }
 0xddc   :  { %542 = vrot.lane.b32.xlu2 %v540_v60, %s791_s10 }
 0xe36   :  { %v543_v61 = vpop.permute.xlu2 %542 }
 0xe37   :  { %727 = vmatmul.msk.f32.vlgmr.msra.gmra.mxu1 %vm158_vm6, %v543_v61 }
 0xeb4   :  { %v563_v63 = vpop.f32.mrf.mxu1 }
 0xeb5   :  { %v566_v0 = vadd.f32 %v563_v63, %v149_v62 }
 0xeb7   :  { %v728_v3 = vmul.f32 -1.442695, %v566_v0 }
 0xeb9   :  { %777 = vpow2.f32 %v728_v3 }
 0xebf   :  { %v778_v4 = vpop.eup %777 }
 0xec0   :  { %v570_v1 = vadd.f32 1.0, %v778_v4 }
 0xec2   :  { %779 = vrcp.f32 %v570_v1  ;;  %v582_v11 = vand.u32 2147483648, %v570_v1  ;;  %v580_v13 = vand.u32 2147483647, %v570_v1  ;;  %vm576_vm13 = vweird.f32 %v570_v1 }
 0xec4   :  { %v583_v15 = vor.u32 1.1754944e-38, %v582_v11  ;;  %vm581_vm15 = vcmp.eq.f32.partialorder %v580_v13, 8.507059e+37 }
 0xec8   :  { %v780_v2 = vpop.eup %779 }
 0xec9   :  { %v572_v5 = vmul.f32 %v780_v2, %v570_v1  ;;  %vm577_vm12 = vweird.f32 %v780_v2 }
 0xeca   :  { %vm578_vm14 = vmor %vm576_vm13, %vm577_vm12 }
 0xecb   :  { %v573_v10 = vsub.f32 1.0, %v572_v5 }
 0xecd   :  { %v574_v12 = vmul.f32 %v780_v2, %v573_v10 }
 0xecf   :  { %v575_v14 = vadd.f32 %v780_v2, %v574_v12 }
 0xed1   :  { %v579_v16 = vsel %vm578_vm14, %v780_v2, %v575_v14 }
 0xed2   :  { %v584_v7 = vsel %vm581_vm15, %v583_v15, %v579_v16 }
 0xed3   :  { %v586_v17 = vmul.f32 2.0, %v584_v7  ;;  %v588_v21 = vmul.f32 %v584_v7, %v534_v57 }
 0xed5   :  { %v729_v18 = vadd.f32 -1.0, %v586_v17 }
 0xed7   :  { %590 = vrot.lane.b32.xlu0 %v729_v18, %s790_s2 }
 0xf49   :  { %v591_v19 = vpop.permute.xlu0 %590 }
 0xf4a   :  { %v593_v20 = vmul.f32 %v591_v19, %v584_v7 }
 0xf4c   :  { %595 = vrot.lane.b32.xlu1 %v593_v20, %s791_s10 }
 0xfbe   :  { %v596_v22 = vpop.permute.xlu1 %595 }
 0xfbf   :  { %v598_v23 = vadd.f32 %v596_v22, %v588_v21 }
 0xfc1   :  { %781 = vtanh.f32 %v598_v23 }
 0xfc7   :  { %v782_v24 = vpop.eup %781 }
 0xfc8   :  { %601 = vrot.lane.b32.xlu2 %v782_v24, %s790_s2 }
0x1022   :  { %v602_v25 = vpop.permute.xlu2 %601 }
0x1023   :  { %v604_v26 = vmul.f32 %v602_v25, %v584_v7 }
0x1025   :  { %606 = vrot.lane.b32.xlu0 %v604_v26, %s791_s10 }
0x1097   :  { %v607_v27 = vpop.permute.xlu0 %606 }
0x1098   :  { %730 = vmatmul.msk.f32.vlgmr.msra.gmra.mxu2 %vm158_vm6, %v607_v27 }
0x111b   :  { %v627_v29 = vpop.f32.mrf.mxu2 }
0x111c   :  { %v630_v30 = vadd.f32 %v627_v29, %v152_v28 }
0x111e   :  { %v731_v31 = vmul.f32 -1.442695, %v630_v30 }
0x1120   :  { %783 = vpow2.f32 %v731_v31 }
0x1126   :  { %v784_v32 = vpop.eup %783 }
0x1127   :  { %v634_v33 = vadd.f32 1.0, %v784_v32 }
0x1129   :  { %785 = vrcp.f32 %v634_v33  ;;  %v646_v37 = vand.u32 2147483648, %v634_v33  ;;  %v644_v39 = vand.u32 2147483647, %v634_v33  ;;  %vm640_vm2 = vweird.f32 %v634_v33 }
0x112b   :  { %v647_v41 = vor.u32 1.1754944e-38, %v646_v37  ;;  %vm645_vm4 = vcmp.eq.f32.partialorder %v644_v39, 8.507059e+37 }
0x112f   :  { %v786_v34 = vpop.eup %785 }
0x1130   :  { %v636_v35 = vmul.f32 %v786_v34, %v634_v33  ;;  %vm641_vm0 = vweird.f32 %v786_v34 }
0x1131   :  { %vm642_vm3 = vmor %vm640_vm2, %vm641_vm0 }
0x1132   :  { %v637_v36 = vsub.f32 1.0, %v636_v35 }
0x1134   :  { %v638_v38 = vmul.f32 %v786_v34, %v637_v36 }
0x1136   :  { %v639_v40 = vadd.f32 %v786_v34, %v638_v38 }
0x1138   :  { %v643_v42 = vsel %vm642_vm3, %v786_v34, %v639_v40 }
0x1139   :  { %v648_v8 = vsel %vm645_vm4, %v647_v41, %v643_v42 }
0x113a   :  { %v650_v9 = vmul.f32 2.0, %v648_v8  ;;  %v652_v47 = vmul.f32 %v648_v8, %v598_v23 }
0x113c   :  { %v732_v43 = vadd.f32 -1.0, %v650_v9 }
0x113e   :  { %654 = vrot.lane.b32.xlu1 %v732_v43, %s790_s2 }
0x1146   :  { %672 = vrot.lane.b32.xlu1 %v739_v46, %s792_s26 }
0x11b0   :  { %v655_v44 = vpop.permute.xlu1 %654 }
0x11b1   :  { %v657_v45 = vmul.f32 %v655_v44, %v648_v8 }
0x11b3   :  { %659 = vrot.lane.b32.xlu2 %v657_v45, %s791_s10 }
0x11b8   :  { %v673_v51 = vpop.permute.xlu1 %672 }
0x120d   :  { %v660_v48 = vpop.permute.xlu2 %659 }
0x120e   :  { %v662_v49 = vadd.f32 %v660_v48, %v652_v47 }
0x1210   :  { %787 = vtanh.f32 %v662_v49 }
0x1216   :  { %v788_v50 = vpop.eup %787 }
0x1217   :  { %665 = vrot.lane.b32.xlu0 %v788_v50, %s790_s2 }
0x1289   :  { %v666_v6 = vpop.permute.xlu0 %665 }
0x128a   :  { %v668_v52 = vmul.f32 %v666_v6, %v648_v8 }
0x128c   :  { %v675_v53 = vmul.f32 %v673_v51, %v668_v52 }
0x128e   :  { %677 = vrot.lane.b32.xlu2 %v675_v53, %s791_s10 }
0x12e8   :  { %v678_v54 = vpop.permute.xlu2 %677 }
0x12e9   :  { %v680_v55 = vsel %vm158_vm6, %v678_v54, 0.0 }
0x12ea   :  { %681 = vadd.xlane.f32.xlu0 %v680_v55 }
0x135d   :  { %v682_v57 = vpop.xlane.xlu0 %681 }
0x135e   :  { %v687_v58 = vadd.f32 %v740_v56, %v682_v57 }
0x1360   :  { %689 = vst.msk [vmem:[%s992_s6] sm:$0xff] %vm688_vm1, %v687_v58 }

</bundles_post_ra>
